<compile_context>
chip_gen: v7x
topology: tpu7x:2x2x1
jax: 0.10.0
libtpu: 0.0.40
codegen_flags: <defaults>
</compile_context>

<pallas_src>
import functools

import jax
import jax.numpy as jnp
from jax.experimental import pallas as pl
from jax.experimental.pallas import tpu as pltpu


# ---------------------------------------------------------------- kernels ---

def _l2norm_kernel(x_ref, o_ref):
    x = x_ref[...]
    o_ref[...] = x * jax.lax.rsqrt(jnp.sum(x * x, axis=-1, keepdims=True))


def l2_normalize(x):
    """Row-wise L2 normalize (matches repo's l2_normalize: no eps)."""
    return pl.pallas_call(
        _l2norm_kernel,
        out_shape=jax.ShapeDtypeStruct(x.shape, x.dtype),
    )(x)


def _dots_kernel(out_ref, bank_ref, dps_ref):
    # out_ref: (B, D), bank_ref: (TN, D) -> dps_ref: (B, TN), f32 accumulation.
    dps_ref[...] = jax.lax.dot_general(
        out_ref[...], bank_ref[...],
        dimension_numbers=(((1,), (1,)), ((), ())),
        preferred_element_type=jnp.float32,
    )


def all_dot_products(outputs, bank, *, tn=8192, vmem_budget_bytes=32 * 1024 * 1024):
    """outputs: (B, D), bank: (N, D) -> (B, N) f32 dot products.

    The bank is streamed in large tiles sized so the double-buffered pipeline
    fits inside `vmem_budget_bytes` (keeps v7x's 64 MiB VMEM safe, leaves
    plenty of headroom on v5e/v6e's 128 MiB).
    """
    B, D = outputs.shape
    N, _ = bank.shape
    bank_bytes = jnp.dtype(bank.dtype).itemsize
    out_bytes = jnp.dtype(outputs.dtype).itemsize

    def step_bytes(t):
        # double-buffered bank tile + double-buffered (B, t) f32 output tile
        # + (small) double-buffered outputs block
        return 2 * (t * D * bank_bytes) + 2 * (B * t * 4) + 2 * (B * D * out_bytes)

    tn = min(tn, N)
    while tn > 512 and step_bytes(tn) > vmem_budget_bytes:
        tn //= 2
    if tn < N:
        tn = max(128, (tn // 128) * 128)        # lane-aligned bank/output tiles

    vmem_limit = int(min(56 * 1024 * 1024,
                         max(32 * 1024 * 1024,
                             step_bytes(tn) + 16 * 1024 * 1024)))

    return pl.pallas_call(
        _dots_kernel,
        out_shape=jax.ShapeDtypeStruct((B, N), jnp.float32),
        grid=(pl.cdiv(N, tn),),
        in_specs=[
            pl.BlockSpec((B, D), lambda j: (0, 0)),
            pl.BlockSpec((tn, D), lambda j: (j, 0)),
        ],
        out_specs=pl.BlockSpec((B, tn), lambda j: (0, j)),
        compiler_params=pltpu.CompilerParams(
            dimension_semantics=("parallel",),
            vmem_limit_bytes=vmem_limit,
        ),
    )(outputs, bank)


def _loss_kernel(dps_ref, blab_ref, tlab_ref, loss_ref, *, t, inv_b, nk):
    # dps_ref : (tb, K)     f32  top-k dot products for this batch tile
    # blab_ref: (nk, tb)    i32  cluster label of each batch element
    # tlab_ref: (nk, tb, K) i32  cluster labels of the top-k neighbors
    # loss_ref: (1, 1) f32 SMEM  scalar accumulator, resident across the grid
    s = dps_ref[...] * (1.0 / t)
    s = s - jnp.max(s, axis=1, keepdims=True)     # stable exp; cancels in num/den
    p = jnp.exp(s)                                # the /Z of _softmax cancels too
    blab = blab_ref[...][:, :, None]              # (nk, tb, 1)
    tlab = tlab_ref[...]                          # (nk, tb, K)
    close = blab[0] == tlab[0]
    for i in range(1, nk):                        # OR over kmeans heads
        close = close | (blab[i] == tlab[i])
    num = jnp.sum(jnp.where(close, p, jnp.zeros_like(p)), axis=1, keepdims=True)
    den = jnp.sum(p, axis=1, keepdims=True)
    partial = jnp.sum(jnp.log(num / den + 1e-7))

    @pl.when(pl.program_id(0) == 0)
    def _():
        loss_ref[0, 0] = 0.0

    loss_ref[0, 0] += -inv_b * partial


def _update_kernel(mem_ref, out_ref, new_ref, *, m):
    # outputs are already L2-normalized upstream (re-normalizing is a no-op in
    # the reference); blend with the gathered bank rows and renormalize.
    blend = mem_ref[...] * m + (1.0 - m) * out_ref[...]
    new_ref[...] = blend * jax.lax.rsqrt(
        jnp.sum(blend * blend, axis=-1, keepdims=True))


# --------------------------------------------------------------- module -----

class LocalAggregationLoss:
    """JAX/Pallas port of LocalAggregationLossModule.forward."""

    def __init__(self, memory_bank_broadcast, cluster_label_broadcast,
                 k=4096, t=0.07, m=0.5, stream_dtype=jnp.bfloat16):
        self.k, self.t, self.m = k, t, m
        self.memory_bank_broadcast = memory_bank_broadcast
        self.cluster_label_broadcast = cluster_label_broadcast
        self.data_len = memory_bank_broadcast[0].shape[0]
        # bf16 streaming copy of the bank for the bandwidth-bound matmul
        # (f32 MXU accumulation keeps dot products accurate); the f32 bank is
        # kept for the tiny per-row gather used by the memory update.
        self.stream_dtype = stream_dtype
        self.memory_bank_stream = [b.astype(stream_dtype)
                                   for b in memory_bank_broadcast]

    def __call__(self, indices, outputs, gpu_idx):
        bank = self.memory_bank_broadcast[gpu_idx]              # (N, D) f32
        bank_stream = self.memory_bank_stream[gpu_idx]          # (N, D) bf16
        cluster_labels = self.cluster_label_broadcast[gpu_idx]  # (nk, N)
        nk = cluster_labels.shape[0]
        B = outputs.shape[0]
        k = min(self.k, self.data_len)

        outputs = l2_normalize(outputs)                         # (B, D) f32
        all_dps = all_dot_products(outputs.astype(self.stream_dtype),
                                   bank_stream)                 # (B, N) f32

        # TODO(synk): fusing a per-tile partial top-k into the dots kernel
        # (to avoid materializing the (B, N) dps array in HBM) needs an
        # in-kernel sort/top-k primitive Pallas-TPU does not expose; topk and
        # the integer gathers stay in plain-JAX glue (order-insensitive,
        # matching torch.topk(sorted=False) semantics).
        back_nei_dps, back_nei_idxs = jax.lax.top_k(all_dps, k)        # (B, K)
        batch_labels = jnp.take(cluster_labels, indices, axis=1)       # (nk, B)
        top_labels = jnp.take(cluster_labels, back_nei_idxs, axis=1)   # (nk, B, K)

        tb = 128 if (B % 128 == 0) else B
        loss = pl.pallas_call(
            functools.partial(_loss_kernel, t=self.t, inv_b=1.0 / B, nk=nk),
            out_shape=jax.ShapeDtypeStruct((1, 1), jnp.float32),
            grid=(B // tb,),
            in_specs=[
                pl.BlockSpec((tb, k), lambda i: (i, 0)),
                pl.BlockSpec((nk, tb), lambda i: (0, i)),
                pl.BlockSpec((nk, tb, k), lambda i: (0, i, 0)),
            ],
            out_specs=pl.BlockSpec(memory_space=pltpu.MemorySpace.SMEM),
            compiler_params=pltpu.CompilerParams(
                dimension_semantics=("arbitrary",)),
        )(back_nei_dps.astype(jnp.float32),
          batch_labels.astype(jnp.int32),
          top_labels.astype(jnp.int32))
        loss = loss.reshape(1)                                  # matches .unsqueeze(0)

        data_memory = jnp.take(bank, indices, axis=0)           # (B, D) gather (glue)
        new_data_memory = pl.pallas_call(
            functools.partial(_update_kernel, m=self.m),
            out_shape=jax.ShapeDtypeStruct(outputs.shape, outputs.dtype),
        )(data_memory, outputs)

        return loss, new_data_memory


# ----------------------------------------------------------------- main -----

if __name__ == "__main__":
    B, D, N, K, NK, N_CLUSTERS = 8, 32, 512, 128, 2, 10

    key = jax.random.PRNGKey(0)
    k1, k2, k3, k4 = jax.random.split(key, 4)

    # Deterministic synthetic "parameters": L2-normalized memory bank + labels.
    bank = jax.random.normal(k1, (N, D), jnp.float32)
    bank = bank / jnp.sqrt(jnp.sum(bank * bank, axis=1, keepdims=True))
    cluster_labels = jax.random.randint(k2, (NK, N), 0, N_CLUSTERS, jnp.int32)

    outputs = jax.random.normal(k3, (B, D), jnp.float32)
    indices = jax.random.randint(k4, (B,), 0, N, jnp.int32)

    module = LocalAggregationLoss([bank], [cluster_labels], k=K, t=0.07, m=0.5)
    loss, new_data_memory = module(indices, outputs, gpu_idx=0)
    jax.block_until_ready((loss, new_data_memory))

    assert loss.shape == (1,)
    assert new_data_memory.shape == (B, D)
    assert bool(jnp.isfinite(loss).all())
    assert bool(jnp.isfinite(new_data_memory).all())
    print("KERNEL_OK")
</pallas_src>

<mosaic_0001>
module attributes {stable_mosaic.version = 11 : i64} {
  func.func @_l2norm_kernel(%arg0: memref<8x32xf32, #tpu.memory_space<vmem>>, %arg1: memref<8x32xf32, #tpu.memory_space<vmem>>) attributes {dimension_semantics = [], scalar_prefetch = 0 : i64, scratch_operands = 0 : i64, tpu.core_type = #tpu.core_type<tc>} {
    %c0 = arith.constant 0 : index
    %c0_0 = arith.constant 0 : index
    %0 = vector.load %arg0[%c0, %c0_0] : memref<8x32xf32, #tpu.memory_space<vmem>>, vector<8x32xf32>
    %1 = arith.mulf %0, %0 : vector<8x32xf32>
    %cst = arith.constant dense<0.000000e+00> : vector<8xf32>
    %2 = vector.multi_reduction <add>, %1, %cst [1] : vector<8x32xf32> to vector<8xf32>
    %3 = vector.shape_cast %2 : vector<8xf32> to vector<8x1xf32>
    %4 = math.rsqrt %3 : vector<8x1xf32>
    %5 = vector.broadcast %4 : vector<8x1xf32> to vector<8x32xf32>
    %6 = arith.mulf %0, %5 : vector<8x32xf32>
    %c0_1 = arith.constant 0 : index
    %c0_2 = arith.constant 0 : index
    %7 = vector.load %arg1[%c0_1, %c0_2] : memref<8x32xf32, #tpu.memory_space<vmem>>, vector<8x32xf32>
    tpu.vector_store %arg1[%c0_1, %c0_2], %6 {strides = array<i32>} : memref<8x32xf32, #tpu.memory_space<vmem>>, vector<8x32xf32>,
    return
  }
}

</mosaic_0001>

<bundles_post_ra>
// kernel: tpu_custom_call.1
= control target key start
LH: loop header
LB: loop body
LE: loop exit
PB: predicated region body
PF: predicated region fallthrough
CT: control target
= control target key end

     0   :  { %6 = vsyncpa [#allocation3], 0  ;;  %s133_s0 = inlined_call_operand.hbm [shape: f32[8,32], index: 0, kind: input, shape index: {}]   ;;  %s134_s1 = inlined_call_operand.hbm [shape: f32[8,32], index: 1, kind: output, shape index: {}]  }
   0x1   :  { %7 = vsyncpa [#allocation4], 0  ;;  %s97_s6 = smov [#allocation2]   ;;  %s49_s10 = scalar_lea.hbm %s133_s0, 128 }
   0x2   :  { %s14_s7 = sshll.u32 %s97_s6, 4  ;;  %p50_p0 = scmp.ne.s32.totalorder %s133_s0, %s49_s10  ;;  %s15_s7 = int_to_ptr.vmem [resolvable:$true] %s14_s7 }
   0x3   :  { %p53_p1 = scmp.lt.u32.totalorder %s49_s10, %s133_s0 }
   0x5   :  { %p55_p2 = pnand %p53_p1, %p50_p0 }
   0x7   :  { %58 = shalt.err (!%p55_p2)
}
   0x8   :  { %s59_s15 = scalar_lea.vmem %s15_s7, 128  ;;  %p64_p4 = scmp.lt.s32.totalorder %s15_s7, %s15_s7 }
   0x9   :  { %p60_p3 = scmp.ne.s32.totalorder %s15_s7, %s59_s15  ;;  %p65_p5 = scmp.lt.s32.totalorder %s59_s15, %s59_s15 }
   0xb   :  { %p66_p6 = por %p65_p5, %p64_p4 }
   0xd   :  { %p67_p7 = pnand %p66_p6, %p60_p3 }
   0xf   :  { %70 = shalt.err (!%p67_p7)
}
  0x10   :  { %17 = dma.hbm_to_vmem [thread:$0]  %s133_s0, 128, %s15_s7, [#allocation3]  }
  0x11   :  { %93 = dma.done.wait [#allocation3], 128  }
  0x12   :  { %94 = vsyncadd [#allocation3], 4294967168  ;;  %v21_v0 = vld [vmem:[#allocation2] sm:$0xff]  ;;  %vm23_vm0 = vcmask 261120   ;;  %s98_s18 = smov [#allocation5]  }
  0x13   :  { %v22_v1 = vmul.f32 %v21_v0, %v21_v0  ;;  %s36_s19 = sshll.u32 %s98_s18, 4  ;;  %s37_s19 = int_to_ptr.vmem [resolvable:$true] %s36_s19 }
  0x14   :  { %s71_s20 = scalar_lea.vmem %s37_s19, 128  ;;  %p76_p9 = scmp.lt.s32.totalorder %s37_s19, %s37_s19 }
  0x15   :  { %v24_v2 = vsel %vm23_vm0, %v22_v1, 0.0  ;;  %p72_p8 = scmp.ne.s32.totalorder %s37_s19, %s71_s20  ;;  %p77_p10 = scmp.lt.s32.totalorder %s71_s20, %s71_s20 }
  0x16   :  { %25 = vadd.xlane.f32.xlu0 %v24_v2 }
  0x17   :  { %p78_p11 = por %p77_p10, %p76_p9 }
  0x19   :  { %p79_p12 = pnand %p78_p11, %p72_p8 }
  0xa3   :  { %v26_v3 = vpop.xlane.xlu0 %25 }
  0xa4   :  { %47 = vrsqrt.f32 %v26_v3 }
  0xae   :  { %v48_v4 = vpop.eup %47 }
  0xaf   :  { %v28_v5 = vmul.f32 %v48_v4, %v21_v0 }
  0xb1   :  { %29 = vst.msk [vmem:[#allocation5] sm:$0xff] %vm23_vm0, %v28_v5 }
  0xb2   :  { %82 = shalt.err (!%p79_p12)
}
  0xb3   :  { %s83_s22 = scalar_lea.hbm %s134_s1, 128 }
  0xb4   :  { %p84_p13 = scmp.ne.s32.totalorder %s134_s1, %s83_s22  ;;  %p87_p0 = scmp.lt.u32.totalorder %s83_s22, %s134_s1 }
  0xb6   :  { %p89_p1 = pnand %p87_p0, %p84_p13 }
  0xb8   :  { %92 = shalt.err (!%p89_p1)
}
  0xb9   :  { %39 = dma.vmem_to_hbm [thread:$0]  %s37_s19, 128, %s134_s1, [#allocation4]  }
  0xba   :  { %95 = dma.done.wait [#allocation4], 128  }
  0xbb   :  { %96 = vsyncadd [#allocation4], 4294967168 }
  0xbc   :  { %43 = vsyncpa [#allocation3], 1 }
  0xbd   :  { %44 = vsyncpa [#allocation4], 1 }

</bundles_post_ra>
